<compile_context>
chip_gen: v6e
topology: v6e:2x2x1
jax: 0.10.0
libtpu: 0.0.40
codegen_flags: <defaults>
</compile_context>

<pallas_src>
from functools import lru_cache

import jax
import jax.numpy as jnp
from jax.experimental import pallas as pl
from jax.experimental.pallas import tpu as pltpu


def _round_up(x, m):
    return (x + m - 1) // m * m


# ------------------------------------------------------------------------- kernel
def olivetti_kernel(x_ref, w1_ref, gb_ref, w2_ref, b2_ref, o_ref):
    split = pl.program_id(0)   # parallel axis: v7x megacore split of the H reduction
    h_idx = pl.program_id(1)   # arbitrary axis: H tiles owned by this split

    # Init the resident output block on the first H tile of each split. Only split 0
    # seeds the linear_2 bias; the per-split partial slabs are summed in the wrapper.
    @pl.when(h_idx == 0)
    def _():
        bias = jnp.where(split == 0, b2_ref[...], jnp.zeros_like(b2_ref[...]))
        o_ref[...] = jnp.broadcast_to(bias, o_ref.shape)

    # ---- linear_1 partial: (B, D_in) @ (D_in, tH) on the MXU (bf16 in, f32 acc).
    # Linear bias intentionally omitted (absorbed by the BN batch-mean subtraction).
    h = jnp.dot(x_ref[...], w1_ref[...], preferred_element_type=jnp.float32)

    # ---- BatchNorm1d (training mode: batch stats, biased variance, eps=1e-5), fused.
    mean = jnp.mean(h, axis=0, keepdims=True)                    # (1, tH)
    centered = h - mean                                          # reused for var
    var = jnp.mean(centered * centered, axis=0, keepdims=True)   # (1, tH), biased
    scale = gb_ref[0:1, :] * jax.lax.rsqrt(var + 1e-5)           # gamma * rsqrt(var+eps)

    # ---- BN affine + ReLU: one mul + one add + one max on the (B, tH) tile.
    a = jnp.maximum(centered * scale + gb_ref[1:2, :], 0.0)

    # ---- linear_2 partial product, accumulated directly into the resident out block.
    o_ref[...] += jnp.dot(a.astype(w2_ref.dtype), w2_ref[...],
                          preferred_element_type=jnp.float32)


# ------------------------------------------------------------ one-time weight prep
def prepare_params(w1, b1, gamma, beta, w2, b2, *, tile_h_max=512):
    """One-time (init-time) weight preparation: lane-pad, cast to bf16, pack gamma/beta.

    Weights are stored pre-transposed as (in_features, out_features). The per-call hot
    path (olivetti_forward) only touches x.
    """
    del b1  # absorbed by training-mode BatchNorm (per-column constant -> no-op)

    D_in, H = w1.shape
    D_out = w2.shape[1]

    d_in_p = _round_up(D_in, 128)
    d_out_p = _round_up(D_out, 128)
    h_p = _round_up(H, 128)
    tile_h = _round_up(min(tile_h_max, h_p), 128)
    h_p = _round_up(h_p, tile_h)
    n_tiles = h_p // tile_h
    # 2-way split of the H reduction across the leading "parallel" grid axis when the
    # tile count allows (uses both TensorCores on v7x; harmless sequentially elsewhere).
    num_splits = 2 if (n_tiles >= 2 and n_tiles % 2 == 0) else 1
    tiles_per_split = n_tiles // num_splits

    w1p = jnp.pad(w1, ((0, d_in_p - D_in), (0, h_p - H))).astype(jnp.bfloat16)
    w2p = jnp.pad(w2, ((0, h_p - H), (0, d_out_p - D_out))).astype(jnp.bfloat16)
    gbp = jnp.stack([jnp.pad(gamma, (0, h_p - H)),
                     jnp.pad(beta, (0, h_p - H))]).astype(jnp.float32)       # (2, h_p)
    b2p = jnp.pad(b2, (0, d_out_p - D_out)).reshape(1, d_out_p).astype(jnp.float32)

    return {
        "w1": w1p, "gb": gbp, "w2": w2p, "b2": b2p,
        "d_in": D_in, "d_out": D_out,
        "d_in_p": d_in_p, "d_out_p": d_out_p, "h_p": h_p,
        "tile_h": tile_h, "num_splits": num_splits, "tiles_per_split": tiles_per_split,
    }


def _vmem_limit_bytes(B, d_in_p, tile_h, d_out_p):
    """Scoped-VMEM request derived from the actual block footprint."""
    bf16, f32 = 2, 4
    streamed = 2 * (d_in_p * tile_h * bf16       # w1 tile (double-buffered)
                    + tile_h * d_out_p * bf16    # w2 tile
                    + 2 * tile_h * f32)          # packed gamma/beta tile
    resident = 2 * (B * d_in_p * bf16            # x block (<= 2 buffers)
                    + d_out_p * f32              # b2
                    + B * d_out_p * f32)         # resident output block
    total = streamed + resident
    # 25% headroom + 2 MiB internal scratch; clamp to a range safe on v5e/v6e/v7x.
    return int(min(max(total * 1.25 + (2 << 20), 16 << 20), 48 << 20))


# ------------------------------------------------------- cached pallas_call builder
@lru_cache(maxsize=None)
def _build_pallas_fn(B, d_in_p, tile_h, tiles_per_split, num_splits, d_out_p,
                     single_buffer_consts):
    const_kwargs = {"pipeline_mode": pl.Buffered(1)} if single_buffer_consts else {}

    def h_glb(c, h):  # global H-tile index for split c, local tile h
        return c * tiles_per_split + h

    in_specs = [
        pl.BlockSpec((B, d_in_p), lambda c, h: (0, 0), **const_kwargs),      # x (resident)
        pl.BlockSpec((d_in_p, tile_h), lambda c, h: (0, h_glb(c, h))),       # w1 tile
        pl.BlockSpec((2, tile_h), lambda c, h: (0, h_glb(c, h))),            # gamma/beta
        pl.BlockSpec((tile_h, d_out_p), lambda c, h: (h_glb(c, h), 0)),      # w2 tile
        pl.BlockSpec((1, d_out_p), lambda c, h: (0, 0), **const_kwargs),     # b2 (resident)
    ]
    # One partial (B, d_out_p) slab per split; resident across the arbitrary H axis.
    out_spec = pl.BlockSpec((None, B, d_out_p), lambda c, h: (c, 0, 0))

    return pl.pallas_call(
        olivetti_kernel,
        out_shape=jax.ShapeDtypeStruct((num_splits, B, d_out_p), jnp.float32),
        grid_spec=pltpu.PrefetchScalarGridSpec(
            num_scalar_prefetch=0,
            grid=(num_splits, tiles_per_split),
            in_specs=in_specs,
            out_specs=out_spec,
        ),
        compiler_params=pltpu.CompilerParams(
            dimension_semantics=("parallel", "arbitrary"),
            vmem_limit_bytes=_vmem_limit_bytes(B, d_in_p, tile_h, d_out_p),
        ),
    )


# ----------------------------------------------------------------------- hot path
def olivetti_forward(x, params):
    """x: (B, D_in) f32; params: output of prepare_params(). Returns (B, D_out) f32."""
    B, D_in = x.shape
    xp = jnp.pad(x, ((0, 0), (0, params["d_in_p"] - D_in))).astype(jnp.bfloat16)

    args = (xp, params["w1"], params["gb"], params["w2"], params["b2"])
    shapes = (B, params["d_in_p"], params["tile_h"], params["tiles_per_split"],
              params["num_splits"], params["d_out_p"])

    out, last_err = None, None
    for single_buf in (True, False):   # prefer single-buffered constant blocks
        try:
            out = jax.block_until_ready(_build_pallas_fn(*shapes, single_buf)(*args))
            break
        except Exception as e:  # noqa: BLE001 - fall back if Buffered(1) unsupported
            last_err = e
    if out is None:
        raise last_err

    # Sum the per-split partial slabs (tiny) and drop lane padding.
    return jnp.sum(out, axis=0)[:, :params["d_out"]]


# ------------------------------------------------------------------------ helpers
def init_params(key, input_size, hidden_size, output_size):
    """Deterministic init mimicking PyTorch's Linear default (U[-1/sqrt(fan_in), +])."""
    k1, k2, k3, k4 = jax.random.split(key, 4)
    bound1 = 1.0 / jnp.sqrt(input_size)
    bound2 = 1.0 / jnp.sqrt(hidden_size)
    # stored as (in, out) == transpose of PyTorch's (out, in)
    w1 = jax.random.uniform(k1, (input_size, hidden_size), jnp.float32, -bound1, bound1)
    b1 = jax.random.uniform(k2, (hidden_size,), jnp.float32, -bound1, bound1)
    w2 = jax.random.uniform(k3, (hidden_size, output_size), jnp.float32, -bound2, bound2)
    b2 = jax.random.uniform(k4, (output_size,), jnp.float32, -bound2, bound2)
    gamma = jnp.ones((hidden_size,), jnp.float32)  # BatchNorm1d default affine params
    beta = jnp.zeros((hidden_size,), jnp.float32)
    return w1, b1, gamma, beta, w2, b2


def reference_forward_f32(x, w1, b1, gamma, beta, w2, b2):
    """Exact module semantics (training-mode BN, with Linear bias), pure f32."""
    h = x @ w1 + b1
    mean = jnp.mean(h, axis=0, keepdims=True)
    var = jnp.mean((h - mean) ** 2, axis=0, keepdims=True)
    hn = (h - mean) * jax.lax.rsqrt(var + 1e-5) * gamma + beta
    return jnp.maximum(hn, 0.0) @ w2 + b2


def reference_forward_bf16(x, w1, gamma, beta, w2, b2):
    """Mirrors the kernel's numerics: bf16 MXU inputs, f32 accumulation, bias absorbed."""
    h = jnp.dot(x.astype(jnp.bfloat16), w1.astype(jnp.bfloat16),
                preferred_element_type=jnp.float32)
    mean = jnp.mean(h, axis=0, keepdims=True)
    c = h - mean
    var = jnp.mean(c * c, axis=0, keepdims=True)
    a = jnp.maximum(c * (gamma * jax.lax.rsqrt(var + 1e-5)) + beta, 0.0)
    return jnp.dot(a.astype(jnp.bfloat16), w2.astype(jnp.bfloat16),
                   preferred_element_type=jnp.float32) + b2


def _check(logits, x, w1, b1, gamma, beta, w2, b2):
    ref_bf16 = reference_forward_bf16(x, w1, gamma, beta, w2, b2)
    assert jnp.allclose(logits, ref_bf16, atol=1e-3, rtol=1e-3), "mismatch vs bf16 reference"
    ref_f32 = reference_forward_f32(x, w1, b1, gamma, beta, w2, b2)
    assert jnp.allclose(logits, ref_f32, atol=5e-2, rtol=5e-2), "mismatch vs f32 module reference"


if __name__ == "__main__":
    key = jax.random.PRNGKey(0)
    k1, k2, k3, k4 = jax.random.split(key, 4)

    # --- Test 1: small shapes, degenerate grid (single H tile, single split).
    batch, input_size, hidden_size, output_size = 8, 64, 32, 16
    x = jax.random.normal(k1, (batch, input_size), jnp.float32)
    w1, b1, gamma, beta, w2, b2 = init_params(k2, input_size, hidden_size, output_size)
    params = prepare_params(w1, b1, gamma, beta, w2, b2)
    logits = olivetti_forward(x, params)
    jax.block_until_ready(logits)
    assert logits.shape == (batch, output_size)
    _check(logits, x, w1, b1, gamma, beta, w2, b2)

    # --- Test 2: multiple H tiles + 2-way parallel split of the reduction
    #     (exercises the accumulate-into-o_ref path and the v7x dual-core split).
    batch2, input_size2, hidden_size2, output_size2 = 8, 200, 512, 40
    x2 = jax.random.normal(k3, (batch2, input_size2), jnp.float32)
    w1b, b1b, gammab, betab, w2b, b2b = init_params(k4, input_size2, hidden_size2,
                                                    output_size2)
    params2 = prepare_params(w1b, b1b, gammab, betab, w2b, b2b, tile_h_max=128)
    assert params2["num_splits"] == 2 and params2["tiles_per_split"] == 2
    logits2 = olivetti_forward(x2, params2)
    jax.block_until_ready(logits2)
    assert logits2.shape == (batch2, output_size2)
    _check(logits2, x2, w1b, b1b, gammab, betab, w2b, b2b)

    print("KERNEL_OK")
</pallas_src>

<mosaic_0001>
module attributes {stable_mosaic.version = 11 : i64} {
  func.func @olivetti_kernel(%arg0: i32, %arg1: i32, %arg2: memref<8x128xbf16, #tpu.memory_space<vmem>>, %arg3: memref<128x128xbf16, #tpu.memory_space<vmem>>, %arg4: memref<2x128xf32, #tpu.memory_space<vmem>>, %arg5: memref<128x128xbf16, #tpu.memory_space<vmem>>, %arg6: memref<1x128xf32, #tpu.memory_space<vmem>>, %arg7: memref<1x8x128xf32, #tpu.memory_space<vmem>>) attributes {dimension_semantics = [#tpu.dimension_semantics<parallel>, #tpu.dimension_semantics<arbitrary>], iteration_bounds = array<i64: 1, 1>, scalar_prefetch = 0 : i64, scratch_operands = 0 : i64, tpu.core_type = #tpu.core_type<tc>, window_params = [{pipeline_mode = #tpu.pipeline_mode<synchronous>, transform_indices = @transform_0, window_bounds = array<i64: 8, 128>}, {transform_indices = @transform_1, window_bounds = array<i64: 128, 128>}, {transform_indices = @transform_2, window_bounds = array<i64: 2, 128>}, {transform_indices = @transform_3, window_bounds = array<i64: 128, 128>}, {pipeline_mode = #tpu.pipeline_mode<synchronous>, transform_indices = @transform_4, window_bounds = array<i64: 1, 128>}, {transform_indices = @transform_5, window_bounds = array<i64: 1, 8, 128>}]} {
    %c0_i32 = arith.constant 0 : i32
    %0 = arith.cmpi eq, %arg1, %c0_i32 : i32
    %1 = arith.extui %0 : i1 to i32
    %c0_i32_0 = arith.constant 0 : i32
    %2 = arith.cmpi ne, %1, %c0_i32_0 : i32
    scf.if %2 {
      %c0_i32_22 = arith.constant 0 : i32
      %38 = arith.cmpi eq, %arg0, %c0_i32_22 : i32
      %c0_23 = arith.constant 0 : index
      %c0_24 = arith.constant 0 : index
      %39 = vector.load %arg6[%c0_23, %c0_24] : memref<1x128xf32, #tpu.memory_space<vmem>>, vector<1x128xf32>
      %cst_25 = arith.constant 0.000000e+00 : f32
      %40 = vector.broadcast %cst_25 : f32 to vector<1x128xf32>
      %41 = arith.select %38, %39, %40 : vector<1x128xf32>
      %42 = vector.shape_cast %41 : vector<1x128xf32> to vector<1x128xf32>
      %43 = vector.broadcast %42 : vector<1x128xf32> to vector<8x128xf32>
      %c0_26 = arith.constant 0 : index
      %c0_27 = arith.constant 0 : index
      %c0_28 = arith.constant 0 : index
      %44 = vector.load %arg7[%c0_26, %c0_27, %c0_28] : memref<1x8x128xf32, #tpu.memory_space<vmem>>, vector<1x8x128xf32>
      %45 = vector.shape_cast %44 : vector<1x8x128xf32> to vector<8x128xf32>
      %46 = vector.shape_cast %43 : vector<8x128xf32> to vector<1x8x128xf32>
      tpu.vector_store %arg7[%c0_26, %c0_27, %c0_28], %46 {strides = array<i32>} : memref<1x8x128xf32, #tpu.memory_space<vmem>>, vector<1x8x128xf32>,
    } else {
    }
    %c0 = arith.constant 0 : index
    %c0_1 = arith.constant 0 : index
    %3 = vector.load %arg2[%c0, %c0_1] : memref<8x128xbf16, #tpu.memory_space<vmem>>, vector<8x128xbf16>
    %c0_2 = arith.constant 0 : index
    %c0_3 = arith.constant 0 : index
    %4 = vector.load %arg3[%c0_2, %c0_3] : memref<128x128xbf16, #tpu.memory_space<vmem>>, vector<128x128xbf16>
    %cst = arith.constant dense<0.000000e+00> : vector<8x128xf32>
    %5 = tpu.matmul %3, %4, %cst {dimension_numbers = #tpu.dot_dimension_numbers<[1], [0], [0], [1], [0, 0, 1, 1], [], []>} : vector<8x128xbf16>, vector<128x128xbf16>, vector<8x128xf32> -> vector<8x128xf32>
    %cst_4 = arith.constant dense<0.000000e+00> : vector<128xf32>
    %6 = vector.multi_reduction <add>, %5, %cst_4 [0] : vector<8x128xf32> to vector<128xf32>
    %7 = vector.shape_cast %6 : vector<128xf32> to vector<1x128xf32>
    %cst_5 = arith.constant 8.000000e+00 : f32
    %8 = vector.broadcast %cst_5 : f32 to vector<1x128xf32>
    %9 = arith.divf %7, %8 : vector<1x128xf32>
    %10 = vector.broadcast %9 : vector<1x128xf32> to vector<8x128xf32>
    %11 = arith.subf %5, %10 : vector<8x128xf32>
    %12 = arith.mulf %11, %11 : vector<8x128xf32>
    %cst_6 = arith.constant dense<0.000000e+00> : vector<128xf32>
    %13 = vector.multi_reduction <add>, %12, %cst_6 [0] : vector<8x128xf32> to vector<128xf32>
    %14 = vector.shape_cast %13 : vector<128xf32> to vector<1x128xf32>
    %cst_7 = arith.constant 8.000000e+00 : f32
    %15 = vector.broadcast %cst_7 : f32 to vector<1x128xf32>
    %16 = arith.divf %14, %15 : vector<1x128xf32>
    %c0_8 = arith.constant 0 : index
    %c0_9 = arith.constant 0 : index
    %17 = vector.load %arg4[%c0_8, %c0_9] : memref<2x128xf32, #tpu.memory_space<vmem>>, vector<1x128xf32>
    %cst_10 = arith.constant 9.99999974E-6 : f32
    %18 = vector.broadcast %cst_10 : f32 to vector<1x128xf32>
    %19 = arith.addf %16, %18 : vector<1x128xf32>
    %20 = math.rsqrt %19 : vector<1x128xf32>
    %21 = arith.mulf %17, %20 : vector<1x128xf32>
    %22 = vector.broadcast %21 : vector<1x128xf32> to vector<8x128xf32>
    %23 = arith.mulf %11, %22 : vector<8x128xf32>
    %c1 = arith.constant 1 : index
    %c0_11 = arith.constant 0 : index
    %24 = vector.load %arg4[%c1, %c0_11] : memref<2x128xf32, #tpu.memory_space<vmem>>, vector<1x128xf32>
    %25 = vector.broadcast %24 : vector<1x128xf32> to vector<8x128xf32>
    %26 = arith.addf %23, %25 : vector<8x128xf32>
    %cst_12 = arith.constant 0.000000e+00 : f32
    %27 = vector.broadcast %cst_12 : f32 to vector<8x128xf32>
    %28 = arith.maximumf %26, %27 : vector<8x128xf32>
    %c0_13 = arith.constant 0 : index
    %c0_14 = arith.constant 0 : index
    %c0_15 = arith.constant 0 : index
    %29 = vector.load %arg7[%c0_13, %c0_14, %c0_15] : memref<1x8x128xf32, #tpu.memory_space<vmem>>, vector<1x8x128xf32>
    %30 = vector.shape_cast %29 : vector<1x8x128xf32> to vector<8x128xf32>
    %31 = arith.truncf %28 : vector<8x128xf32> to vector<8x128xbf16>
    %c0_16 = arith.constant 0 : index
    %c0_17 = arith.constant 0 : index
    %32 = vector.load %arg5[%c0_16, %c0_17] : memref<128x128xbf16, #tpu.memory_space<vmem>>, vector<128x128xbf16>
    %cst_18 = arith.constant dense<0.000000e+00> : vector<8x128xf32>
    %33 = tpu.matmul %31, %32, %cst_18 {dimension_numbers = #tpu.dot_dimension_numbers<[1], [0], [0], [1], [0, 0, 1, 1], [], []>} : vector<8x128xbf16>, vector<128x128xbf16>, vector<8x128xf32> -> vector<8x128xf32>
    %34 = arith.addf %30, %33 : vector<8x128xf32>
    %c0_19 = arith.constant 0 : index
    %c0_20 = arith.constant 0 : index
    %c0_21 = arith.constant 0 : index
    %35 = vector.load %arg7[%c0_19, %c0_20, %c0_21] : memref<1x8x128xf32, #tpu.memory_space<vmem>>, vector<1x8x128xf32>
    %36 = vector.shape_cast %35 : vector<1x8x128xf32> to vector<8x128xf32>
    %37 = vector.shape_cast %34 : vector<8x128xf32> to vector<1x8x128xf32>
    tpu.vector_store %arg7[%c0_19, %c0_20, %c0_21], %37 {strides = array<i32>} : memref<1x8x128xf32, #tpu.memory_space<vmem>>, vector<1x8x128xf32>,
    return
  }
  func.func @transform_0(%arg0: i32, %arg1: i32) -> (i32, i32) {
    %c0_i32 = arith.constant 0 : i32
    %c0_i32_0 = arith.constant 0 : i32
    %c0_i32_1 = arith.constant 0 : i32
    return %c0_i32, %c0_i32_0 : i32, i32
  }
  func.func @transform_1(%arg0: i32, %arg1: i32) -> (i32, i32) {
    %c1_i32 = arith.constant 1 : i32
    %0 = arith.muli %arg0, %c1_i32 : i32
    %1 = arith.addi %0, %arg1 : i32
    %c0_i32 = arith.constant 0 : i32
    %c0_i32_0 = arith.constant 0 : i32
    return %c0_i32, %1 : i32, i32
  }
  func.func @transform_2(%arg0: i32, %arg1: i32) -> (i32, i32) {
    %c1_i32 = arith.constant 1 : i32
    %0 = arith.muli %arg0, %c1_i32 : i32
    %1 = arith.addi %0, %arg1 : i32
    %c0_i32 = arith.constant 0 : i32
    %c0_i32_0 = arith.constant 0 : i32
    return %c0_i32, %1 : i32, i32
  }
  func.func @transform_3(%arg0: i32, %arg1: i32) -> (i32, i32) {
    %c1_i32 = arith.constant 1 : i32
    %0 = arith.muli %arg0, %c1_i32 : i32
    %1 = arith.addi %0, %arg1 : i32
    %c0_i32 = arith.constant 0 : i32
    %c0_i32_0 = arith.constant 0 : i32
    return %1, %c0_i32 : i32, i32
  }
  func.func @transform_4(%arg0: i32, %arg1: i32) -> (i32, i32) {
    %c0_i32 = arith.constant 0 : i32
    %c0_i32_0 = arith.constant 0 : i32
    %c0_i32_1 = arith.constant 0 : i32
    return %c0_i32, %c0_i32_0 : i32, i32
  }
  func.func @transform_5(%arg0: i32, %arg1: i32) -> (i32, i32, i32) {
    %c0_i32 = arith.constant 0 : i32
    %c0_i32_0 = arith.constant 0 : i32
    %c0_i32_1 = arith.constant 0 : i32
    return %arg0, %c0_i32, %c0_i32_0 : i32, i32, i32
  }
}

module attributes {stable_mosaic.version = 11 : i64} {
  func.func @olivetti_kernel(%arg0: i32, %arg1: i32, %arg2: memref<8x128xbf16, #tpu.memory_space<vmem>>, %arg3: memref<128x128xbf16, #tpu.memory_space<vmem>>, %arg4: memref<2x128xf32, #tpu.memory_space<vmem>>, %arg5: memref<128x128xbf16, #tpu.memory_space<vmem>>, %arg6: memref<1x128xf32, #tpu.memory_space<vmem>>, %arg7: memref<1x8x128xf32, #tpu.memory_space<vmem>>) attributes {dimension_semantics = [#tpu.dimension_semantics<parallel>, #tpu.dimension_semantics<arbitrary>], iteration_bounds = array<i64: 1, 1>, scalar_prefetch = 0 : i64, scratch_operands = 0 : i64, tpu.core_type = #tpu.core_type<tc>, window_params = [{pipeline_mode = #tpu.pipeline_mode<synchronous>, transform_indices = @transform_0, window_bounds = array<i64: 8, 128>}, {transform_indices = @transform_1, window_bounds = array<i64: 128, 128>}, {transform_indices = @transform_2, window_bounds = array<i64: 2, 128>}, {transform_indices = @transform_3, window_bounds = array<i64: 128, 128>}, {pipeline_mode = #tpu.pipeline_mode<synchronous>, transform_indices = @transform_4, window_bounds = array<i64: 1, 128>}, {transform_indices = @transform_5, window_bounds = array<i64: 1, 8, 128>}]} {
    %c0_i32 = arith.constant 0 : i32
    %0 = arith.cmpi eq, %arg1, %c0_i32 : i32
    %1 = arith.extui %0 : i1 to i32
    %c0_i32_0 = arith.constant 0 : i32
    %2 = arith.cmpi ne, %1, %c0_i32_0 : i32
    scf.if %2 {
      %c0_i32_22 = arith.constant 0 : i32
      %38 = arith.cmpi eq, %arg0, %c0_i32_22 : i32
      %c0_23 = arith.constant 0 : index
      %c0_24 = arith.constant 0 : index
      %39 = vector.load %arg6[%c0_23, %c0_24] : memref<1x128xf32, #tpu.memory_space<vmem>>, vector<1x128xf32>
      %cst_25 = arith.constant 0.000000e+00 : f32
      %40 = vector.broadcast %cst_25 : f32 to vector<1x128xf32>
      %41 = arith.select %38, %39, %40 : vector<1x128xf32>
      %42 = vector.shape_cast %41 : vector<1x128xf32> to vector<1x128xf32>
      %43 = vector.broadcast %42 : vector<1x128xf32> to vector<8x128xf32>
      %c0_26 = arith.constant 0 : index
      %c0_27 = arith.constant 0 : index
      %c0_28 = arith.constant 0 : index
      %44 = vector.load %arg7[%c0_26, %c0_27, %c0_28] : memref<1x8x128xf32, #tpu.memory_space<vmem>>, vector<1x8x128xf32>
      %45 = vector.shape_cast %44 : vector<1x8x128xf32> to vector<8x128xf32>
      %46 = vector.shape_cast %43 : vector<8x128xf32> to vector<1x8x128xf32>
      tpu.vector_store %arg7[%c0_26, %c0_27, %c0_28], %46 {strides = array<i32>} : memref<1x8x128xf32, #tpu.memory_space<vmem>>, vector<1x8x128xf32>,
    } else {
    }
    %c0 = arith.constant 0 : index
    %c0_1 = arith.constant 0 : index
    %3 = vector.load %arg2[%c0, %c0_1] : memref<8x128xbf16, #tpu.memory_space<vmem>>, vector<8x128xbf16>
    %c0_2 = arith.constant 0 : index
    %c0_3 = arith.constant 0 : index
    %4 = vector.load %arg3[%c0_2, %c0_3] : memref<128x128xbf16, #tpu.memory_space<vmem>>, vector<128x128xbf16>
    %cst = arith.constant dense<0.000000e+00> : vector<8x128xf32>
    %5 = tpu.matmul %3, %4, %cst {dimension_numbers = #tpu.dot_dimension_numbers<[1], [0], [0], [1], [0, 0, 1, 1], [], []>} : vector<8x128xbf16>, vector<128x128xbf16>, vector<8x128xf32> -> vector<8x128xf32>
    %cst_4 = arith.constant dense<0.000000e+00> : vector<128xf32>
    %6 = vector.multi_reduction <add>, %5, %cst_4 [0] : vector<8x128xf32> to vector<128xf32>
    %7 = vector.shape_cast %6 : vector<128xf32> to vector<1x128xf32>
    %cst_5 = arith.constant 8.000000e+00 : f32
    %8 = vector.broadcast %cst_5 : f32 to vector<1x128xf32>
    %9 = arith.divf %7, %8 : vector<1x128xf32>
    %10 = vector.broadcast %9 : vector<1x128xf32> to vector<8x128xf32>
    %11 = arith.subf %5, %10 : vector<8x128xf32>
    %12 = arith.mulf %11, %11 : vector<8x128xf32>
    %cst_6 = arith.constant dense<0.000000e+00> : vector<128xf32>
    %13 = vector.multi_reduction <add>, %12, %cst_6 [0] : vector<8x128xf32> to vector<128xf32>
    %14 = vector.shape_cast %13 : vector<128xf32> to vector<1x128xf32>
    %cst_7 = arith.constant 8.000000e+00 : f32
    %15 = vector.broadcast %cst_7 : f32 to vector<1x128xf32>
    %16 = arith.divf %14, %15 : vector<1x128xf32>
    %c0_8 = arith.constant 0 : index
    %c0_9 = arith.constant 0 : index
    %17 = vector.load %arg4[%c0_8, %c0_9] : memref<2x128xf32, #tpu.memory_space<vmem>>, vector<1x128xf32>
    %cst_10 = arith.constant 9.99999974E-6 : f32
    %18 = vector.broadcast %cst_10 : f32 to vector<1x128xf32>
    %19 = arith.addf %16, %18 : vector<1x128xf32>
    %20 = math.rsqrt %19 : vector<1x128xf32>
    %21 = arith.mulf %17, %20 : vector<1x128xf32>
    %22 = vector.broadcast %21 : vector<1x128xf32> to vector<8x128xf32>
    %23 = arith.mulf %11, %22 : vector<8x128xf32>
    %c1 = arith.constant 1 : index
    %c0_11 = arith.constant 0 : index
    %24 = vector.load %arg4[%c1, %c0_11] : memref<2x128xf32, #tpu.memory_space<vmem>>, vector<1x128xf32>
    %25 = vector.broadcast %24 : vector<1x128xf32> to vector<8x128xf32>
    %26 = arith.addf %23, %25 : vector<8x128xf32>
    %cst_12 = arith.constant 0.000000e+00 : f32
    %27 = vector.broadcast %cst_12 : f32 to vector<8x128xf32>
    %28 = arith.maximumf %26, %27 : vector<8x128xf32>
    %c0_13 = arith.constant 0 : index
    %c0_14 = arith.constant 0 : index
    %c0_15 = arith.constant 0 : index
    %29 = vector.load %arg7[%c0_13, %c0_14, %c0_15] : memref<1x8x128xf32, #tpu.memory_space<vmem>>, vector<1x8x128xf32>
    %30 = vector.shape_cast %29 : vector<1x8x128xf32> to vector<8x128xf32>
    %31 = arith.truncf %28 : vector<8x128xf32> to vector<8x128xbf16>
    %c0_16 = arith.constant 0 : index
    %c0_17 = arith.constant 0 : index
    %32 = vector.load %arg5[%c0_16, %c0_17] : memref<128x128xbf16, #tpu.memory_space<vmem>>, vector<128x128xbf16>
    %cst_18 = arith.constant dense<0.000000e+00> : vector<8x128xf32>
    %33 = tpu.matmul %31, %32, %cst_18 {dimension_numbers = #tpu.dot_dimension_numbers<[1], [0], [0], [1], [0, 0, 1, 1], [], []>} : vector<8x128xbf16>, vector<128x128xbf16>, vector<8x128xf32> -> vector<8x128xf32>
    %34 = arith.addf %30, %33 : vector<8x128xf32>
    %c0_19 = arith.constant 0 : index
    %c0_20 = arith.constant 0 : index
    %c0_21 = arith.constant 0 : index
    %35 = vector.load %arg7[%c0_19, %c0_20, %c0_21] : memref<1x8x128xf32, #tpu.memory_space<vmem>>, vector<1x8x128xf32>
    %36 = vector.shape_cast %35 : vector<1x8x128xf32> to vector<8x128xf32>
    %37 = vector.shape_cast %34 : vector<8x128xf32> to vector<1x8x128xf32>
    tpu.vector_store %arg7[%c0_19, %c0_20, %c0_21], %37 {strides = array<i32>} : memref<1x8x128xf32, #tpu.memory_space<vmem>>, vector<1x8x128xf32>,
    return
  }
  func.func @transform_0(%arg0: i32, %arg1: i32) -> (i32, i32) {
    %c0_i32 = arith.constant 0 : i32
    %c0_i32_0 = arith.constant 0 : i32
    %c0_i32_1 = arith.constant 0 : i32
    return %c0_i32, %c0_i32_0 : i32, i32
  }
  func.func @transform_1(%arg0: i32, %arg1: i32) -> (i32, i32) {
    %c1_i32 = arith.constant 1 : i32
    %0 = arith.muli %arg0, %c1_i32 : i32
    %1 = arith.addi %0, %arg1 : i32
    %c0_i32 = arith.constant 0 : i32
    %c0_i32_0 = arith.constant 0 : i32
    return %c0_i32, %1 : i32, i32
  }
  func.func @transform_2(%arg0: i32, %arg1: i32) -> (i32, i32) {
    %c1_i32 = arith.constant 1 : i32
    %0 = arith.muli %arg0, %c1_i32 : i32
    %1 = arith.addi %0, %arg1 : i32
    %c0_i32 = arith.constant 0 : i32
    %c0_i32_0 = arith.constant 0 : i32
    return %c0_i32, %1 : i32, i32
  }
  func.func @transform_3(%arg0: i32, %arg1: i32) -> (i32, i32) {
    %c1_i32 = arith.constant 1 : i32
    %0 = arith.muli %arg0, %c1_i32 : i32
    %1 = arith.addi %0, %arg1 : i32
    %c0_i32 = arith.constant 0 : i32
    %c0_i32_0 = arith.constant 0 : i32
    return %1, %c0_i32 : i32, i32
  }
  func.func @transform_4(%arg0: i32, %arg1: i32) -> (i32, i32) {
    %c0_i32 = arith.constant 0 : i32
    %c0_i32_0 = arith.constant 0 : i32
    %c0_i32_1 = arith.constant 0 : i32
    return %c0_i32, %c0_i32_0 : i32, i32
  }
  func.func @transform_5(%arg0: i32, %arg1: i32) -> (i32, i32, i32) {
    %c0_i32 = arith.constant 0 : i32
    %c0_i32_0 = arith.constant 0 : i32
    %c0_i32_1 = arith.constant 0 : i32
    return %arg0, %c0_i32, %c0_i32_0 : i32, i32, i32
  }
}

</mosaic_0001>

<bundles_post_ra>
// kernel: tpu_custom_call.1
= control target key start
LH: loop header
LB: loop body
LE: loop exit
PB: predicated region body
PF: predicated region fallthrough
CT: control target
= control target key end

     0   :  { %10 = vsyncpa [#allocation3], 0  ;;  %s620_s0 = inlined_call_operand.hbm [shape: bf16[8,128], index: 0, kind: input, shape index: {}]   ;;  %s621_s1 = inlined_call_operand.hbm [shape: bf16[128,128], index: 1, kind: input, shape index: {}]   ;;  %s622_s2 = inlined_call_operand.vmem [shape: f32[2,128], index: 2, kind: input, shape index: {}]   ;;  %s623_s3 = inlined_call_operand.hbm [shape: bf16[128,128], index: 3, kind: input, shape index: {}]   ;;  %s624_s4 = inlined_call_operand.vmem [shape: f32[1,128], index: 4, kind: input, shape index: {}]   ;;  %s625_s5 = inlined_call_operand.hbm [shape: f32[1,8,128], index: 5, kind: output, shape index: {}]  }
   0x1   :  { %11 = vsyncpa [#allocation6], 0 }
   0x2   :  { %12 = vsyncpa [#allocation4], 0  ;;  %s561_s18 = smov [#allocation5]  }
   0x3   :  { %s31_s19 = sshll.u32 %s561_s18, 4  ;;  %s32_s19 = int_to_ptr.vmem [resolvable:$true] %s31_s19 }
   0x4   :  { %s483_s20 = scalar_lea.vmem %s32_s19, 1024  ;;  %p488_p1 = scmp.lt.s32.totalorder %s32_s19, %s32_s19 }
   0x5   :  { %p484_p0 = scmp.ne.s32.totalorder %s32_s19, %s483_s20  ;;  %p489_p2 = scmp.lt.s32.totalorder %s483_s20, %s483_s20 }
   0x7   :  { %p490_p3 = por %p489_p2, %p488_p1 }
   0x9   :  { %p491_p4 = pnand %p490_p3, %p484_p0 }
   0xb   :  { %494 = shalt.err (!%p491_p4)
}
   0xc   :  { %s562_s21 = smov 64   ;;  %s563_s22 = smov 4  }
   0xd   :  { %37 = dma.hbm_to_vmem [thread:$0]  %s621_s1, 1024, %s32_s19, [#allocation6], %s562_s21, %s562_s21, %s563_s22  }
   0xe   :  { %s564_s25 = smov [#allocation2]   ;;  %s565_s27 = smov [#allocation7]  }
   0xf   :  { %s19_s26 = sshll.u32 %s564_s25, 4  ;;  %s55_s28 = sshll.u32 %s565_s27, 4  ;;  %s20_s26 = int_to_ptr.vmem [resolvable:$true] %s19_s26  ;;  %s56_s28 = int_to_ptr.vmem [resolvable:$true] %s55_s28 }
  0x10   :  { %s503_s29 = scalar_lea.vmem %s20_s26, 64  ;;  %p508_p6 = scmp.lt.s32.totalorder %s20_s26, %s20_s26 }
  0x11   :  { %p504_p5 = scmp.ne.s32.totalorder %s20_s26, %s503_s29  ;;  %p509_p7 = scmp.lt.s32.totalorder %s503_s29, %s503_s29 }
  0x13   :  { %p510_p8 = por %p509_p7, %p508_p6 }
  0x15   :  { %p511_p9 = pnand %p510_p8, %p504_p5 }
  0x17   :  { %514 = shalt.err (!%p511_p9)
}
  0x18   :  { %22 = dma.hbm_to_vmem [thread:$0]  %s620_s0, 64, %s20_s26, [#allocation3]  }
  0x19   :  { %s523_s7 = scalar_lea.vmem %s56_s28, 1024  ;;  %p528_p11 = scmp.lt.s32.totalorder %s56_s28, %s56_s28 }
  0x1a   :  { %p524_p10 = scmp.ne.s32.totalorder %s56_s28, %s523_s7  ;;  %p529_p12 = scmp.lt.s32.totalorder %s523_s7, %s523_s7 }
  0x1c   :  { %p530_p13 = por %p529_p12, %p528_p11 }
  0x1e   :  { %p531_p0 = pnand %p530_p13, %p524_p10 }
  0x20   :  { %534 = shalt.err (!%p531_p0)
}
  0x21   :  { %61 = dma.hbm_to_vmem [thread:$0]  %s623_s3, 1024, %s56_s28, [#allocation6], %s562_s21, %s562_s21, %s563_s22  }
  0x22   :  { %555 = dma.done.wait [#allocation3], 64  }
  0x23   :  { %556 = vsyncadd [#allocation3], 4294967232 }
  0x24   :  { %557 = dma.done.wait [#allocation6], 2048  }
  0x25   :  { %558 = vsyncadd [#allocation6], 4294965248  ;;  %v566_v0 = vmov 0.0   ;;  %vm567_vm0 = vmmov 0   ;;  %v457_v1 = vld [vmem:[#allocation5 + $0x38] sm:$0xff]   ;;  %v458_v2 = vld [vmem:[#allocation5 + $0x30] sm:$0xff]   ;;  %v231_v39 = vlaneseq }
  0x26   :  { %409 = vmatprep.subr.bf16.mxu0 %v566_v0  ;;  %425 = vmatprep.mubr.msk.bf16.mxu0 %vm567_vm0, %v566_v0  ;;  %v459_v3 = vld [vmem:[#allocation5 + $0x28] sm:$0xff]   ;;  %v460_v4 = vld [vmem:[#allocation5 + $0x20] sm:$0xff]   ;;  %v461_v5 = vld [vmem:[#allocation5 + $0x18] sm:$0xff]   ;;  %s568_s13 = smov [#allocation8]  }
  0x27   :  { %429 = vmatprep.subr.bf16.mxu1 %v566_v0  ;;  %445 = vmatprep.mubr.msk.bf16.mxu1 %vm567_vm0, %v566_v0  ;;  %v462_v6 = vld [vmem:[#allocation5 + $0x10] sm:$0xff]   ;;  %v463_v7 = vld [vmem:[#allocation5 + $0x8] sm:$0xff]   ;;  %v464_v8 = vld [vmem:[#allocation5] sm:$0xff]   ;;  %v232_v40 = vshrl.u32 %v231_v39, 7  ;;  %s357_s14 = sshll.u32 %s568_s13, 4  ;;  %s358_s14 = int_to_ptr.vmem [resolvable:$true] %s357_s14 }
  0x28   :  { %410 = vmatpush3.bf16.msra.mxu0 %v457_v1  ;;  %v105_v9 = vld [vmem:[#allocation2] sm:$0xf]  ;;  %v466_v11 = vld [vmem:[#allocation7 + $0x30] sm:$0xff]   ;;  %v467_v12 = vld [vmem:[#allocation7 + $0x28] sm:$0xff]   ;;  %s535_s15 = scalar_lea.vmem %s358_s14, 128  ;;  %p540_p2 = scmp.lt.s32.totalorder %s358_s14, %s358_s14 }
  0x29   :  { %411 = vmatprep.subr.bf16.mxu0 %v566_v0  ;;  %v465_v10 = vld [vmem:[#allocation7 + $0x38] sm:$0xff]   ;;  %v468_v13 = vld [vmem:[#allocation7 + $0x20] sm:$0xff]   ;;  %v470_v15 = vld [vmem:[#allocation7 + $0x10] sm:$0xff]   ;;  %v233_v42 = vsub.s32 0, %v232_v40  ;;  %p536_p1 = scmp.ne.s32.totalorder %s358_s14, %s535_s15  ;;  %p541_p3 = scmp.lt.s32.totalorder %s535_s15, %s535_s15 }
  0x2a   :  { %430 = vmatpush3.bf16.msra.mxu1 %v465_v10  ;;  %v469_v14 = vld [vmem:[#allocation7 + $0x18] sm:$0xff]   ;;  %v471_v16 = vld [vmem:[#allocation7 + $0x8] sm:$0xff]   ;;  %v472_v17 = vld [vmem:[#allocation7] sm:$0xff]  }
  0x2b   :  { %431 = vmatprep.subr.bf16.mxu1 %v566_v0  ;;  %v227_v41 = vld [vmem:[%s622_s2] sm:$0x1]  ;;  %v382_v46 = vld [vmem:[%s622_s2 + $0x1] ss:$0 sm:$0xff]  ;;  %p542_p4 = por %p541_p3, %p540_p2 }
  0x2c   :  { %412 = vmatpush3.bf16.msra.mxu0 %v458_v2  ;;  %v373_v51 = vld [vmem:[%s624_s4] ss:$0 sm:$0xff] }
  0x2d   :  { %413 = vmatprep.subr.bf16.mxu0 %v566_v0  ;;  %p543_p5 = pnand %p542_p4, %p536_p1 }
  0x2e   :  { %432 = vmatpush3.bf16.msra.mxu1 %v466_v11 }
  0x2f   :  { %433 = vmatprep.subr.bf16.mxu1 %v566_v0 }
  0x30   :  { %414 = vmatpush3.bf16.msra.mxu0 %v459_v3 }
  0x31   :  { %415 = vmatprep.subr.bf16.mxu0 %v566_v0 }
  0x32   :  { %434 = vmatpush3.bf16.msra.mxu1 %v467_v12 }
  0x33   :  { %435 = vmatprep.subr.bf16.mxu1 %v566_v0 }
  0x34   :  { %416 = vmatpush3.bf16.msra.mxu0 %v460_v4 }
  0x35   :  { %417 = vmatprep.subr.bf16.mxu0 %v566_v0 }
  0x36   :  { %436 = vmatpush3.bf16.msra.mxu1 %v468_v13 }
  0x37   :  { %437 = vmatprep.subr.bf16.mxu1 %v566_v0 }
  0x38   :  { %418 = vmatpush3.bf16.msra.mxu0 %v461_v5 }
  0x39   :  { %419 = vmatprep.subr.bf16.mxu0 %v566_v0 }
  0x3a   :  { %438 = vmatpush3.bf16.msra.mxu1 %v469_v14 }
  0x3b   :  { %439 = vmatprep.subr.bf16.mxu1 %v566_v0 }
  0x3c   :  { %420 = vmatpush3.bf16.msra.mxu0 %v462_v6 }
  0x3d   :  { %421 = vmatprep.subr.bf16.mxu0 %v566_v0 }
  0x3e   :  { %440 = vmatpush3.bf16.msra.mxu1 %v470_v15 }
  0x3f   :  { %441 = vmatprep.subr.bf16.mxu1 %v566_v0 }
  0x40   :  { %422 = vmatpush3.bf16.msra.mxu0 %v463_v7 }
  0x41   :  { %423 = vmatprep.subr.bf16.mxu0 %v566_v0 }
  0x42   :  { %442 = vmatpush3.bf16.msra.mxu1 %v471_v16 }
  0x43   :  { %443 = vmatprep.subr.bf16.mxu1 %v566_v0 }
  0x44   :  { %424 = vmatpush3.bf16.msra.mxu0 %v464_v8 }
  0x46   :  { %444 = vmatpush3.bf16.msra.mxu1 %v472_v17 }
  0x47   :  { %426 = vmatmul.mubr.bf16.vlgmr.msra.gmra.mxu0 %v105_v9 }
 0x107   :  { %v204_v18 = vpop.f32.mrf.mxu0 }
 0x108   :  { %v210_v19 = vrot.slane %v204_v18, 4 }
 0x109   :  { %v427_v20 = vpop.f32.mrf.mxu0 }
 0x10a   :  { %v211_v21 = vadd.f32 %v210_v19, %v204_v18 }
 0x10b   :  { %v207_v22 = vpop.f32.mrf.mxu0 }
 0x10c   :  { %v212_v23 = vrot.slane %v211_v21, 2 }
 0x10d   :  { %v428_v24 = vpop.f32.mrf.mxu0 }
 0x10e   :  { %v213_v25 = vadd.f32 %v212_v23, %v211_v21 }
 0x110   :  { %v214_v26 = vrot.slane %v213_v25, 1 }
 0x112   :  { %v215_v27 = vadd.f32 %v214_v26, %v213_v25 }
 0x114   :  { %v217_v28 = vmul.f32 0.125, %v215_v27 }
 0x116   :  { %v218_v29 = vsub.f32 %v204_v18, %v217_v28 }
 0x118   :  { %v219_v30 = vmul.f32 %v218_v29, %v218_v29 }
 0x11a   :  { %v220_v31 = vrot.slane %v219_v30, 4 }
 0x11c   :  { %v221_v32 = vadd.f32 %v220_v31, %v219_v30 }
 0x11e   :  { %v222_v33 = vrot.slane %v221_v32, 2 }
 0x120   :  { %v223_v34 = vadd.f32 %v222_v33, %v221_v32 }
 0x122   :  { %v224_v35 = vrot.slane %v223_v34, 1 }
 0x124   :  { %v225_v36 = vadd.f32 %v224_v35, %v223_v34 }
 0x126   :  { %v226_v37 = vmul.f32 0.125, %v225_v36 }
 0x128   :  { %v228_v38 = vadd.f32 1e-05, %v226_v37 }
 0x12a   :  { %473 = vrsqrt.f32 %v228_v38 }
 0x137   :  { %v474_v43 = vpop.eup %473 }
 0x138   :  { %v230_v44 = vmul.f32 %v474_v43, %v227_v41 }
 0x13a   :  { %v234_v45 = vrot.slane %v230_v44, %v233_v42 }
 0x13c   :  { %v235_v47 = vmul.f32 %v234_v45, %v218_v29 }
 0x13e   :  { %v241_v48 = vadd.f32 %v382_v46, %v235_v47 }
 0x140   :  { %v242_v49 = vmax.f32 %v241_v48, 0.0 }
 0x142   :  { %v244_v50 = vpack.c.bf16 %v242_v49, %v242_v49 }
 0x144   :  { %446 = vmatmul.mubr.bf16.vlgmr.msra.gmra.mxu1 %v244_v50 }
 0x204   :  { %v343_v52 = vpop.f32.mrf.mxu1 }
 0x205   :  { %v349_v53 = vadd.f32 %v373_v51, %v343_v52 }
 0x206   :  { %v447_v54 = vpop.f32.mrf.mxu1 }
 0x207   :  { %350 = vst [vmem:[#allocation8] sm:$0xff] %v349_v53 }
 0x208   :  { %v346_v55 = vpop.f32.mrf.mxu1 }
 0x209   :  { %546 = shalt.err (!%p543_p5)
}
 0x20a   :  { %360 = dma.vmem_to_hbm [thread:$0]  %s358_s14, 128, %s625_s5, [#allocation4]   ;;  %v448_v56 = vpop.f32.mrf.mxu1 }
 0x20b   :  { %559 = dma.done.wait [#allocation4], 128  }
 0x20c   :  { %560 = vsyncadd [#allocation4], 4294967168 }
 0x20d   :  { %364 = vsyncpa [#allocation3], 1 }
 0x20e   :  { %365 = vsyncpa [#allocation6], 1 }
 0x20f   :  { %366 = vsyncpa [#allocation4], 1 }

// kernel: tpu_custom_call.1
= control target key start
LH: loop header
LB: loop body
LE: loop exit
PB: predicated region body
PF: predicated region fallthrough
CT: control target
= control target key end

     0   :  { %10 = vsyncpa [#allocation3], 0  ;;  %s620_s0 = inlined_call_operand.hbm [shape: bf16[8,128], index: 0, kind: input, shape index: {}]   ;;  %s621_s1 = inlined_call_operand.hbm [shape: bf16[128,128], index: 1, kind: input, shape index: {}]   ;;  %s622_s2 = inlined_call_operand.vmem [shape: f32[2,128], index: 2, kind: input, shape index: {}]   ;;  %s623_s3 = inlined_call_operand.hbm [shape: bf16[128,128], index: 3, kind: input, shape index: {}]   ;;  %s624_s4 = inlined_call_operand.vmem [shape: f32[1,128], index: 4, kind: input, shape index: {}]   ;;  %s625_s5 = inlined_call_operand.hbm [shape: f32[1,8,128], index: 5, kind: output, shape index: {}]  }
   0x1   :  { %11 = vsyncpa [#allocation6], 0 }
   0x2   :  { %12 = vsyncpa [#allocation4], 0  ;;  %s561_s18 = smov [#allocation5]  }
   0x3   :  { %s31_s19 = sshll.u32 %s561_s18, 4  ;;  %s32_s19 = int_to_ptr.vmem [resolvable:$true] %s31_s19 }
   0x4   :  { %s483_s20 = scalar_lea.vmem %s32_s19, 1024  ;;  %p488_p1 = scmp.lt.s32.totalorder %s32_s19, %s32_s19 }
   0x5   :  { %p484_p0 = scmp.ne.s32.totalorder %s32_s19, %s483_s20  ;;  %p489_p2 = scmp.lt.s32.totalorder %s483_s20, %s483_s20 }
   0x7   :  { %p490_p3 = por %p489_p2, %p488_p1 }
   0x9   :  { %p491_p4 = pnand %p490_p3, %p484_p0 }
   0xb   :  { %494 = shalt.err (!%p491_p4)
}
   0xc   :  { %s562_s21 = smov 64   ;;  %s563_s22 = smov 4  }
   0xd   :  { %37 = dma.hbm_to_vmem [thread:$0]  %s621_s1, 1024, %s32_s19, [#allocation6], %s562_s21, %s562_s21, %s563_s22  }
   0xe   :  { %s564_s25 = smov [#allocation2]   ;;  %s565_s27 = smov [#allocation7]  }
   0xf   :  { %s19_s26 = sshll.u32 %s564_s25, 4  ;;  %s55_s28 = sshll.u32 %s565_s27, 4  ;;  %s20_s26 = int_to_ptr.vmem [resolvable:$true] %s19_s26  ;;  %s56_s28 = int_to_ptr.vmem [resolvable:$true] %s55_s28 }
  0x10   :  { %s503_s29 = scalar_lea.vmem %s20_s26, 64  ;;  %p508_p6 = scmp.lt.s32.totalorder %s20_s26, %s20_s26 }
  0x11   :  { %p504_p5 = scmp.ne.s32.totalorder %s20_s26, %s503_s29  ;;  %p509_p7 = scmp.lt.s32.totalorder %s503_s29, %s503_s29 }
  0x13   :  { %p510_p8 = por %p509_p7, %p508_p6 }
  0x15   :  { %p511_p9 = pnand %p510_p8, %p504_p5 }
  0x17   :  { %514 = shalt.err (!%p511_p9)
}
  0x18   :  { %22 = dma.hbm_to_vmem [thread:$0]  %s620_s0, 64, %s20_s26, [#allocation3]  }
  0x19   :  { %s523_s7 = scalar_lea.vmem %s56_s28, 1024  ;;  %p528_p11 = scmp.lt.s32.totalorder %s56_s28, %s56_s28 }
  0x1a   :  { %p524_p10 = scmp.ne.s32.totalorder %s56_s28, %s523_s7  ;;  %p529_p12 = scmp.lt.s32.totalorder %s523_s7, %s523_s7 }
  0x1c   :  { %p530_p13 = por %p529_p12, %p528_p11 }
  0x1e   :  { %p531_p0 = pnand %p530_p13, %p524_p10 }
  0x20   :  { %534 = shalt.err (!%p531_p0)
}
  0x21   :  { %61 = dma.hbm_to_vmem [thread:$0]  %s623_s3, 1024, %s56_s28, [#allocation6], %s562_s21, %s562_s21, %s563_s22  }
  0x22   :  { %555 = dma.done.wait [#allocation3], 64  }
  0x23   :  { %556 = vsyncadd [#allocation3], 4294967232 }
  0x24   :  { %557 = dma.done.wait [#allocation6], 2048  }
  0x25   :  { %558 = vsyncadd [#allocation6], 4294965248  ;;  %v566_v0 = vmov 0.0   ;;  %vm567_vm0 = vmmov 0   ;;  %v457_v1 = vld [vmem:[#allocation5 + $0x38] sm:$0xff]   ;;  %v458_v2 = vld [vmem:[#allocation5 + $0x30] sm:$0xff]   ;;  %v231_v39 = vlaneseq }
  0x26   :  { %409 = vmatprep.subr.bf16.mxu0 %v566_v0  ;;  %425 = vmatprep.mubr.msk.bf16.mxu0 %vm567_vm0, %v566_v0  ;;  %v459_v3 = vld [vmem:[#allocation5 + $0x28] sm:$0xff]   ;;  %v460_v4 = vld [vmem:[#allocation5 + $0x20] sm:$0xff]   ;;  %v461_v5 = vld [vmem:[#allocation5 + $0x18] sm:$0xff]   ;;  %s568_s13 = smov [#allocation8]  }
  0x27   :  { %429 = vmatprep.subr.bf16.mxu1 %v566_v0  ;;  %445 = vmatprep.mubr.msk.bf16.mxu1 %vm567_vm0, %v566_v0  ;;  %v462_v6 = vld [vmem:[#allocation5 + $0x10] sm:$0xff]   ;;  %v463_v7 = vld [vmem:[#allocation5 + $0x8] sm:$0xff]   ;;  %v464_v8 = vld [vmem:[#allocation5] sm:$0xff]   ;;  %v232_v40 = vshrl.u32 %v231_v39, 7  ;;  %s357_s14 = sshll.u32 %s568_s13, 4  ;;  %s358_s14 = int_to_ptr.vmem [resolvable:$true] %s357_s14 }
  0x28   :  { %410 = vmatpush3.bf16.msra.mxu0 %v457_v1  ;;  %v105_v9 = vld [vmem:[#allocation2] sm:$0xf]  ;;  %v466_v11 = vld [vmem:[#allocation7 + $0x30] sm:$0xff]   ;;  %v467_v12 = vld [vmem:[#allocation7 + $0x28] sm:$0xff]   ;;  %s535_s15 = scalar_lea.vmem %s358_s14, 128  ;;  %p540_p2 = scmp.lt.s32.totalorder %s358_s14, %s358_s14 }
  0x29   :  { %411 = vmatprep.subr.bf16.mxu0 %v566_v0  ;;  %v465_v10 = vld [vmem:[#allocation7 + $0x38] sm:$0xff]   ;;  %v468_v13 = vld [vmem:[#allocation7 + $0x20] sm:$0xff]   ;;  %v470_v15 = vld [vmem:[#allocation7 + $0x10] sm:$0xff]   ;;  %v233_v42 = vsub.s32 0, %v232_v40  ;;  %p536_p1 = scmp.ne.s32.totalorder %s358_s14, %s535_s15  ;;  %p541_p3 = scmp.lt.s32.totalorder %s535_s15, %s535_s15 }
  0x2a   :  { %430 = vmatpush3.bf16.msra.mxu1 %v465_v10  ;;  %v469_v14 = vld [vmem:[#allocation7 + $0x18] sm:$0xff]   ;;  %v471_v16 = vld [vmem:[#allocation7 + $0x8] sm:$0xff]   ;;  %v472_v17 = vld [vmem:[#allocation7] sm:$0xff]  }
  0x2b   :  { %431 = vmatprep.subr.bf16.mxu1 %v566_v0  ;;  %v227_v41 = vld [vmem:[%s622_s2] sm:$0x1]  ;;  %v382_v46 = vld [vmem:[%s622_s2 + $0x1] ss:$0 sm:$0xff]  ;;  %p542_p4 = por %p541_p3, %p540_p2 }
  0x2c   :  { %412 = vmatpush3.bf16.msra.mxu0 %v458_v2  ;;  %v373_v51 = vld [vmem:[%s624_s4] ss:$0 sm:$0xff] }
  0x2d   :  { %413 = vmatprep.subr.bf16.mxu0 %v566_v0  ;;  %p543_p5 = pnand %p542_p4, %p536_p1 }
  0x2e   :  { %432 = vmatpush3.bf16.msra.mxu1 %v466_v11 }
  0x2f   :  { %433 = vmatprep.subr.bf16.mxu1 %v566_v0 }
  0x30   :  { %414 = vmatpush3.bf16.msra.mxu0 %v459_v3 }
  0x31   :  { %415 = vmatprep.subr.bf16.mxu0 %v566_v0 }
  0x32   :  { %434 = vmatpush3.bf16.msra.mxu1 %v467_v12 }
  0x33   :  { %435 = vmatprep.subr.bf16.mxu1 %v566_v0 }
  0x34   :  { %416 = vmatpush3.bf16.msra.mxu0 %v460_v4 }
  0x35   :  { %417 = vmatprep.subr.bf16.mxu0 %v566_v0 }
  0x36   :  { %436 = vmatpush3.bf16.msra.mxu1 %v468_v13 }
  0x37   :  { %437 = vmatprep.subr.bf16.mxu1 %v566_v0 }
  0x38   :  { %418 = vmatpush3.bf16.msra.mxu0 %v461_v5 }
  0x39   :  { %419 = vmatprep.subr.bf16.mxu0 %v566_v0 }
  0x3a   :  { %438 = vmatpush3.bf16.msra.mxu1 %v469_v14 }
  0x3b   :  { %439 = vmatprep.subr.bf16.mxu1 %v566_v0 }
  0x3c   :  { %420 = vmatpush3.bf16.msra.mxu0 %v462_v6 }
  0x3d   :  { %421 = vmatprep.subr.bf16.mxu0 %v566_v0 }
  0x3e   :  { %440 = vmatpush3.bf16.msra.mxu1 %v470_v15 }
  0x3f   :  { %441 = vmatprep.subr.bf16.mxu1 %v566_v0 }
  0x40   :  { %422 = vmatpush3.bf16.msra.mxu0 %v463_v7 }
  0x41   :  { %423 = vmatprep.subr.bf16.mxu0 %v566_v0 }
  0x42   :  { %442 = vmatpush3.bf16.msra.mxu1 %v471_v16 }
  0x43   :  { %443 = vmatprep.subr.bf16.mxu1 %v566_v0 }
  0x44   :  { %424 = vmatpush3.bf16.msra.mxu0 %v464_v8 }
  0x46   :  { %444 = vmatpush3.bf16.msra.mxu1 %v472_v17 }
  0x47   :  { %426 = vmatmul.mubr.bf16.vlgmr.msra.gmra.mxu0 %v105_v9 }
 0x107   :  { %v204_v18 = vpop.f32.mrf.mxu0 }
 0x108   :  { %v210_v19 = vrot.slane %v204_v18, 4 }
 0x109   :  { %v427_v20 = vpop.f32.mrf.mxu0 }
 0x10a   :  { %v211_v21 = vadd.f32 %v210_v19, %v204_v18 }
 0x10b   :  { %v207_v22 = vpop.f32.mrf.mxu0 }
 0x10c   :  { %v212_v23 = vrot.slane %v211_v21, 2 }
 0x10d   :  { %v428_v24 = vpop.f32.mrf.mxu0 }
 0x10e   :  { %v213_v25 = vadd.f32 %v212_v23, %v211_v21 }
 0x110   :  { %v214_v26 = vrot.slane %v213_v25, 1 }
 0x112   :  { %v215_v27 = vadd.f32 %v214_v26, %v213_v25 }
 0x114   :  { %v217_v28 = vmul.f32 0.125, %v215_v27 }
 0x116   :  { %v218_v29 = vsub.f32 %v204_v18, %v217_v28 }
 0x118   :  { %v219_v30 = vmul.f32 %v218_v29, %v218_v29 }
 0x11a   :  { %v220_v31 = vrot.slane %v219_v30, 4 }
 0x11c   :  { %v221_v32 = vadd.f32 %v220_v31, %v219_v30 }
 0x11e   :  { %v222_v33 = vrot.slane %v221_v32, 2 }
 0x120   :  { %v223_v34 = vadd.f32 %v222_v33, %v221_v32 }
 0x122   :  { %v224_v35 = vrot.slane %v223_v34, 1 }
 0x124   :  { %v225_v36 = vadd.f32 %v224_v35, %v223_v34 }
 0x126   :  { %v226_v37 = vmul.f32 0.125, %v225_v36 }
 0x128   :  { %v228_v38 = vadd.f32 1e-05, %v226_v37 }
 0x12a   :  { %473 = vrsqrt.f32 %v228_v38 }
 0x137   :  { %v474_v43 = vpop.eup %473 }
 0x138   :  { %v230_v44 = vmul.f32 %v474_v43, %v227_v41 }
 0x13a   :  { %v234_v45 = vrot.slane %v230_v44, %v233_v42 }
 0x13c   :  { %v235_v47 = vmul.f32 %v234_v45, %v218_v29 }
 0x13e   :  { %v241_v48 = vadd.f32 %v382_v46, %v235_v47 }
 0x140   :  { %v242_v49 = vmax.f32 %v241_v48, 0.0 }
 0x142   :  { %v244_v50 = vpack.c.bf16 %v242_v49, %v242_v49 }
 0x144   :  { %446 = vmatmul.mubr.bf16.vlgmr.msra.gmra.mxu1 %v244_v50 }
 0x204   :  { %v343_v52 = vpop.f32.mrf.mxu1 }
 0x205   :  { %v349_v53 = vadd.f32 %v373_v51, %v343_v52 }
 0x206   :  { %v447_v54 = vpop.f32.mrf.mxu1 }
 0x207   :  { %350 = vst [vmem:[#allocation8] sm:$0xff] %v349_v53 }
 0x208   :  { %v346_v55 = vpop.f32.mrf.mxu1 }
 0x209   :  { %546 = shalt.err (!%p543_p5)
}
 0x20a   :  { %360 = dma.vmem_to_hbm [thread:$0]  %s358_s14, 128, %s625_s5, [#allocation4]   ;;  %v448_v56 = vpop.f32.mrf.mxu1 }
 0x20b   :  { %559 = dma.done.wait [#allocation4], 128  }
 0x20c   :  { %560 = vsyncadd [#allocation4], 4294967168 }
 0x20d   :  { %364 = vsyncpa [#allocation3], 1 }
 0x20e   :  { %365 = vsyncpa [#allocation6], 1 }
 0x20f   :  { %366 = vsyncpa [#allocation4], 1 }

</bundles_post_ra>
